<compile_context>
chip_gen: v5e
topology: v5e:2x2
jax: 0.10.0
libtpu: 0.0.40
codegen_flags: <defaults>
</compile_context>

<pallas_src>
import jax
import jax.numpy as jnp
from jax.experimental import pallas as pl
from jax.experimental.pallas import tpu as pltpu


def _round_up(x, m):
    return ((x + m - 1) // m) * m


def ale_kernel(x_ref, w_ref, b_ref, c_ref, o_ref, h_ref):
    # Grid = (batch tiles, class tiles); class axis iterates fastest ("arbitrary").
    j = pl.program_id(1)

    @pl.when(j == 0)
    def _():
        # h = x @ W + b (f32 accumulation on the MXU), computed once per batch
        # tile and cached in VMEM as bf16 for reuse across every class tile.
        h = jnp.dot(x_ref[...], w_ref[...], preferred_element_type=jnp.float32)
        h_ref[...] = (h + b_ref[...]).astype(h_ref.dtype)

    # out_tile = h @ C_tile : bf16 MXU inputs, f32 accumulation, lane-dense store.
    o_ref[...] = jnp.dot(
        h_ref[...], c_ref[...], preferred_element_type=jnp.float32
    ).astype(o_ref.dtype)


def prepare_ale_params(weight, bias, class_vectors, operand_dtype=jnp.bfloat16):
    """Pad + pre-transpose the grid-invariant operands ONCE. Cache the result
    across forward calls so the per-call path only pads the activations.

    weight: (V, F), bias: (V,), class_vectors: (C, V).
    Returns (W_fv_padded, bias_padded, C_vc_padded, num_classes)."""
    V, F = weight.shape
    C, _ = class_vectors.shape
    F_pad = _round_up(F, 128)   # contraction dim of dot 1 (lane axis of x)
    V_pad = _round_up(V, 128)   # contraction dim of dot 2 (lane axis of h)
    C_pad = _round_up(C, 128)   # lane axis of output (unmasked vst)

    w_p = jnp.zeros((F_pad, V_pad), operand_dtype).at[:F, :V].set(
        weight.T.astype(operand_dtype))
    # Bias stays f32 (tiny) and is added to the f32 accumulator.
    b_p = jnp.zeros((1, V_pad), jnp.float32).at[0, :V].set(bias.astype(jnp.float32))
    c_p = jnp.zeros((V_pad, C_pad), operand_dtype).at[:V, :C].set(
        class_vectors.T.astype(operand_dtype))
    return w_p, b_p, c_p, C


def _pick_batch_tile(batch):
    b8 = _round_up(batch, 8)
    if b8 <= 256:
        return b8  # batch too small to split usefully; single tile.
    # Large batch: 128-aligned M (v5e MXU), cap at 512, and guarantee >= 2 grid
    # steps so the second TensorCore on v7x gets work.
    return min(512, _round_up((b8 + 1) // 2, 128))


def _vmem_limit_bytes(tm, tn, F_pad, V_pad, c_buffers):
    need = (
        2 * tm * F_pad * 2            # x tile (bf16, double-buffered)
        + F_pad * V_pad * 2           # W (bf16, single buffer, invariant)
        + 8 * V_pad * 4               # bias (f32, one padded sublane tile)
        + c_buffers * V_pad * tn * 2  # classVector tile(s) (bf16)
        + 2 * tm * tn * 4             # output tile (f32, double-buffered)
        + tm * V_pad * 2              # cached h scratch (bf16)
    )
    try:
        cap = pltpu.get_tpu_info().vmem_capacity_bytes
    except Exception:
        cap = 64 << 20
    # Footprint + headroom for compiler scratch; never ask for ~all of VMEM.
    return int(min(need + (8 << 20), 0.75 * cap))


def ale_forward_prepared(image_features, prepared, *, class_tile=2048):
    """image_features: (B, F); prepared: output of prepare_ale_params."""
    w_p, b_p, c_p, num_classes = prepared
    B, F = image_features.shape
    F_pad, V_pad = w_p.shape
    _, C_pad = c_p.shape

    tm = _pick_batch_tile(B)
    B_pad = _round_up(B, tm)
    tn = min(C_pad, _round_up(class_tile, 128))
    nj = C_pad // tn

    op_dtype = w_p.dtype
    # Zero-padding is numerically exact; padded rows/cols are sliced off below.
    x_p = jnp.pad(image_features.astype(op_dtype),
                  ((0, B_pad - B), (0, F_pad - F)))

    # classVectors block is grid-invariant only when there is a single class tile.
    c_buffers = 1 if nj == 1 else 2

    out_padded = pl.pallas_call(
        ale_kernel,
        out_shape=jax.ShapeDtypeStruct((B_pad, C_pad), jnp.float32),
        grid_spec=pltpu.PrefetchScalarGridSpec(
            num_scalar_prefetch=0,
            grid=(B_pad // tm, nj),
            in_specs=[
                pl.BlockSpec((tm, F_pad), lambda i, j: (i, 0)),        # x tile
                pl.BlockSpec((F_pad, V_pad), lambda i, j: (0, 0),
                             pipeline_mode=pl.Buffered(1)),            # W (invariant)
                pl.BlockSpec((1, V_pad), lambda i, j: (0, 0),
                             pipeline_mode=pl.Buffered(1)),            # bias (invariant)
                pl.BlockSpec((V_pad, tn), lambda i, j: (0, j),
                             pipeline_mode=pl.Buffered(c_buffers)),    # class tile
            ],
            out_specs=pl.BlockSpec((tm, tn), lambda i, j: (i, j)),
            scratch_shapes=[pltpu.VMEM((tm, V_pad), op_dtype)],        # cached h
        ),
        compiler_params=pltpu.CompilerParams(
            # Class axis must stay sequential: the h cache is filled at j == 0.
            dimension_semantics=("parallel", "arbitrary"),
            vmem_limit_bytes=_vmem_limit_bytes(tm, tn, F_pad, V_pad, c_buffers),
        ),
    )(x_p, w_p, b_p, c_p)

    # Strip padding back to the logical (B, C) result.
    return out_padded[:B, :num_classes]


def ale_forward(image_features, weight, bias, class_vectors):
    """One-shot convenience wrapper (prepare + forward). For repeated calls,
    cache prepare_ale_params() and call ale_forward_prepared directly."""
    prepared = prepare_ale_params(weight, bias, class_vectors)
    return ale_forward_prepared(image_features, prepared)


if __name__ == "__main__":
    # Small shapes implied by the forward pass.
    batch, feature_dim, vector_dim, num_classes = 8, 32, 16, 8

    key = jax.random.PRNGKey(0)
    kx, kc, kw, kb = jax.random.split(key, 4)

    image_features = jax.random.normal(kx, (batch, feature_dim), dtype=jnp.float32)
    class_vectors = jax.random.normal(kc, (num_classes, vector_dim), dtype=jnp.float32)

    # Deterministic parameter init (same shapes as torch.nn.Linear(feature_dim, vector_dim)).
    bound = 1.0 / (feature_dim ** 0.5)
    weight = jax.random.uniform(
        kw, (vector_dim, feature_dim), minval=-bound, maxval=bound, dtype=jnp.float32
    )
    bias = jax.random.uniform(
        kb, (vector_dim,), minval=-bound, maxval=bound, dtype=jnp.float32
    )

    # Prepare (pad + transpose) the weights once, then run the kernel.
    prepared = prepare_ale_params(weight, bias, class_vectors)
    out = ale_forward_prepared(image_features, prepared)
    out = jax.block_until_ready(out)

    # Reference check in plain JAX (matches PyTorch semantics), f32.
    ref = (image_features @ weight.T + bias) @ class_vectors.T
    assert out.shape == (batch, num_classes)
    # bf16 MXU operands with f32 accumulation -> loosened tolerance vs f32 ref.
    assert jnp.allclose(out, ref, atol=3e-2, rtol=3e-2)

    print("KERNEL_OK")
</pallas_src>

<mosaic_0001>
module attributes {stable_mosaic.version = 11 : i64} {
  func.func @ale_kernel(%arg0: i32, %arg1: i32, %arg2: memref<8x128xbf16, #tpu.memory_space<vmem>>, %arg3: memref<128x128xbf16, #tpu.memory_space<vmem>>, %arg4: memref<1x128xf32, #tpu.memory_space<vmem>>, %arg5: memref<128x128xbf16, #tpu.memory_space<vmem>>, %arg6: memref<8x128xf32, #tpu.memory_space<vmem>>, %arg7: memref<8x128xbf16, #tpu.memory_space<vmem>>) attributes {dimension_semantics = [#tpu.dimension_semantics<parallel>, #tpu.dimension_semantics<arbitrary>], iteration_bounds = array<i64: 1, 1>, scalar_prefetch = 0 : i64, scratch_operands = 1 : i64, tpu.core_type = #tpu.core_type<tc>, window_params = [{transform_indices = @transform_0, window_bounds = array<i64: 8, 128>}, {pipeline_mode = #tpu.pipeline_mode<synchronous>, transform_indices = @transform_1, window_bounds = array<i64: 128, 128>}, {pipeline_mode = #tpu.pipeline_mode<synchronous>, transform_indices = @transform_2, window_bounds = array<i64: 1, 128>}, {pipeline_mode = #tpu.pipeline_mode<synchronous>, transform_indices = @transform_3, window_bounds = array<i64: 128, 128>}, {transform_indices = @transform_4, window_bounds = array<i64: 8, 128>}]} {
    %c0_i32 = arith.constant 0 : i32
    %0 = arith.cmpi eq, %arg1, %c0_i32 : i32
    %1 = arith.extui %0 : i1 to i32
    %c0_i32_0 = arith.constant 0 : i32
    %2 = arith.cmpi ne, %1, %c0_i32_0 : i32
    scf.if %2 {
      %c0_6 = arith.constant 0 : index
      %c0_7 = arith.constant 0 : index
      %7 = vector.load %arg2[%c0_6, %c0_7] : memref<8x128xbf16, #tpu.memory_space<vmem>>, vector<8x128xbf16>
      %c0_8 = arith.constant 0 : index
      %c0_9 = arith.constant 0 : index
      %8 = vector.load %arg3[%c0_8, %c0_9] : memref<128x128xbf16, #tpu.memory_space<vmem>>, vector<128x128xbf16>
      %cst_10 = arith.constant dense<0.000000e+00> : vector<8x128xf32>
      %9 = tpu.matmul %7, %8, %cst_10 {dimension_numbers = #tpu.dot_dimension_numbers<[1], [0], [0], [1], [0, 0, 1, 1], [], []>} : vector<8x128xbf16>, vector<128x128xbf16>, vector<8x128xf32> -> vector<8x128xf32>
      %c0_11 = arith.constant 0 : index
      %c0_12 = arith.constant 0 : index
      %10 = vector.load %arg4[%c0_11, %c0_12] : memref<1x128xf32, #tpu.memory_space<vmem>>, vector<1x128xf32>
      %11 = vector.broadcast %10 : vector<1x128xf32> to vector<8x128xf32>
      %12 = arith.addf %9, %11 : vector<8x128xf32>
      %13 = arith.truncf %12 : vector<8x128xf32> to vector<8x128xbf16>
      %c0_13 = arith.constant 0 : index
      %c0_14 = arith.constant 0 : index
      %14 = vector.load %arg7[%c0_13, %c0_14] : memref<8x128xbf16, #tpu.memory_space<vmem>>, vector<8x128xbf16>
      tpu.vector_store %arg7[%c0_13, %c0_14], %13 {strides = array<i32>} : memref<8x128xbf16, #tpu.memory_space<vmem>>, vector<8x128xbf16>,
    } else {
    }
    %c0 = arith.constant 0 : index
    %c0_1 = arith.constant 0 : index
    %3 = vector.load %arg7[%c0, %c0_1] : memref<8x128xbf16, #tpu.memory_space<vmem>>, vector<8x128xbf16>
    %c0_2 = arith.constant 0 : index
    %c0_3 = arith.constant 0 : index
    %4 = vector.load %arg5[%c0_2, %c0_3] : memref<128x128xbf16, #tpu.memory_space<vmem>>, vector<128x128xbf16>
    %cst = arith.constant dense<0.000000e+00> : vector<8x128xf32>
    %5 = tpu.matmul %3, %4, %cst {dimension_numbers = #tpu.dot_dimension_numbers<[1], [0], [0], [1], [0, 0, 1, 1], [], []>} : vector<8x128xbf16>, vector<128x128xbf16>, vector<8x128xf32> -> vector<8x128xf32>
    %c0_4 = arith.constant 0 : index
    %c0_5 = arith.constant 0 : index
    %6 = vector.load %arg6[%c0_4, %c0_5] : memref<8x128xf32, #tpu.memory_space<vmem>>, vector<8x128xf32>
    tpu.vector_store %arg6[%c0_4, %c0_5], %5 {strides = array<i32>} : memref<8x128xf32, #tpu.memory_space<vmem>>, vector<8x128xf32>,
    return
  }
  func.func @transform_0(%arg0: i32, %arg1: i32) -> (i32, i32) {
    %c0_i32 = arith.constant 0 : i32
    %c0_i32_0 = arith.constant 0 : i32
    return %arg0, %c0_i32 : i32, i32
  }
  func.func @transform_1(%arg0: i32, %arg1: i32) -> (i32, i32) {
    %c0_i32 = arith.constant 0 : i32
    %c0_i32_0 = arith.constant 0 : i32
    %c0_i32_1 = arith.constant 0 : i32
    return %c0_i32, %c0_i32_0 : i32, i32
  }
  func.func @transform_2(%arg0: i32, %arg1: i32) -> (i32, i32) {
    %c0_i32 = arith.constant 0 : i32
    %c0_i32_0 = arith.constant 0 : i32
    %c0_i32_1 = arith.constant 0 : i32
    return %c0_i32, %c0_i32_0 : i32, i32
  }
  func.func @transform_3(%arg0: i32, %arg1: i32) -> (i32, i32) {
    %c0_i32 = arith.constant 0 : i32
    %c0_i32_0 = arith.constant 0 : i32
    return %c0_i32, %arg1 : i32, i32
  }
  func.func @transform_4(%arg0: i32, %arg1: i32) -> (i32, i32) {
    %c0_i32 = arith.constant 0 : i32
    return %arg0, %arg1 : i32, i32
  }
}

</mosaic_0001>

<bundles_post_ra>
// kernel: tpu_custom_call.1
= control target key start
LH: loop header
LB: loop body
LE: loop exit
PB: predicated region body
PF: predicated region fallthrough
CT: control target
= control target key end

     0   :  { %9 = vsyncpa [#allocation4], 0  ;;  %s483_s0 = inlined_call_operand.hbm [shape: bf16[8,128], index: 0, kind: input, shape index: {}]   ;;  %s484_s1 = inlined_call_operand.hbm [shape: bf16[128,128], index: 1, kind: input, shape index: {}]   ;;  %s485_s2 = inlined_call_operand.vmem [shape: f32[1,128], index: 2, kind: input, shape index: {}]   ;;  %s486_s3 = inlined_call_operand.hbm [shape: bf16[128,128], index: 3, kind: input, shape index: {}]   ;;  %s487_s4 = inlined_call_operand.hbm [shape: f32[8,128], index: 4, kind: output, shape index: {}]  }
   0x1   :  { %10 = vsyncpa [#allocation7], 0  ;;  %s27_s17 = sshll.u32 %s484_s1, 4  ;;  %s28_s17 = int_to_ptr.hbm [resolvable:$true] %s27_s17 }
   0x2   :  { %11 = vsyncpa [#allocation5], 0  ;;  %s437_s18 = smov [#allocation6]   ;;  %s17_s22 = sshll.u32 %s483_s0, 4  ;;  %s18_s22 = int_to_ptr.hbm [resolvable:$true] %s17_s22 }
   0x3   :  { %s29_s19 = sshll.u32 %s437_s18, 4  ;;  %s438_s23 = smov 64   ;;  %s30_s19 = int_to_ptr.vmem [resolvable:$true] %s29_s19 }
   0x4   :  { %s439_s24 = smov 4   ;;  %s440_s25 = smov [#allocation3]  }
   0x5   :  { %35 = dma.hbm_to_vmem [thread:$0]  %s28_s17, 1024, %s30_s19, [#allocation7], %s438_s23, %s438_s23, %s439_s24  }
   0x6   :  { %s19_s26 = sshll.u32 %s440_s25, 4  ;;  %s42_s29 = sshll.u32 %s486_s3, 4  ;;  %s20_s26 = int_to_ptr.vmem [resolvable:$true] %s19_s26  ;;  %s43_s29 = int_to_ptr.hbm [resolvable:$true] %s42_s29 }
   0x7   :  { %22 = dma.hbm_to_vmem [thread:$0]  %s18_s22, 64, %s20_s26, [#allocation4]  }
   0x8   :  { %s441_s1 = smov [#allocation8]  }
   0x9   :  { %s44_s30 = sshll.u32 %s441_s1, 4  ;;  %s45_s30 = int_to_ptr.vmem [resolvable:$true] %s44_s30 }
   0xa   :  { %50 = dma.hbm_to_vmem [thread:$0]  %s43_s29, 1024, %s45_s30, [#allocation7], %s438_s23, %s438_s23, %s439_s24  }
   0xb   :  { %431 = dma.done.wait [#allocation4], 64  }
   0xc   :  { %432 = vsyncadd [#allocation4], 4294967232 }
   0xd   :  { %433 = dma.done.wait [#allocation7], 2048  }
   0xe   :  { %434 = vsyncadd [#allocation7], 4294965248  ;;  %v319_v0 = vld [vmem:[#allocation6 + $0x38] sm:$0xff]  ;;  %v318_v1 = vld [vmem:[#allocation6 + $0x30] sm:$0xff]  ;;  %s442_s5 = smov [#allocation9]   ;;  %s237_s9 = sshll.u32 %s487_s4, 4  ;;  %s238_s9 = int_to_ptr.hbm [resolvable:$true] %s237_s9 }
   0xf   :  { %136 = vmatpush.bf16.msra.mxu0 %v319_v0  ;;  %v327_v2 = vld [vmem:[#allocation8 + $0x38] sm:$0xff]  ;;  %v326_v3 = vld [vmem:[#allocation8 + $0x30] sm:$0xff]  ;;  %v317_v4 = vld [vmem:[#allocation6 + $0x28] sm:$0xff]  ;;  %s235_s6 = sshll.u32 %s442_s5, 4  ;;  %s236_s6 = int_to_ptr.vmem [resolvable:$true] %s235_s6 }
  0x10   :  { %216 = vmatpush.bf16.msra.mxu1 %v327_v2  ;;  %v325_v5 = vld [vmem:[#allocation8 + $0x28] sm:$0xff]  ;;  %v316_v6 = vld [vmem:[#allocation6 + $0x20] sm:$0xff]  ;;  %v315_v8 = vld [vmem:[#allocation6 + $0x18] sm:$0xff] }
  0x11   :  { %v324_v7 = vld [vmem:[#allocation8 + $0x20] sm:$0xff]  ;;  %v323_v9 = vld [vmem:[#allocation8 + $0x18] sm:$0xff]  ;;  %v314_v10 = vld [vmem:[#allocation6 + $0x10] sm:$0xff] }
  0x12   :  { %v313_v11 = vld [vmem:[#allocation6 + $0x8] sm:$0xff]  ;;  %v312_v12 = vld [vmem:[#allocation6] sm:$0xff]  ;;  %v67_v13 = vld [vmem:[#allocation3] sm:$0xf] }
  0x13   :  { %137 = vmatpush.bf16.msra.mxu0 %v318_v1  ;;  %v322_v14 = vld [vmem:[#allocation8 + $0x10] sm:$0xff]  ;;  %v321_v15 = vld [vmem:[#allocation8 + $0x8] sm:$0xff]  ;;  %v320_v16 = vld [vmem:[#allocation8] sm:$0xff] }
  0x14   :  { %217 = vmatpush.bf16.msra.mxu1 %v326_v3  ;;  %v334_v17 = vld [vmem:[%s485_s2] ss:$0 sm:$0xff] }
  0x17   :  { %138 = vmatpush.bf16.msra.mxu0 %v317_v4 }
  0x18   :  { %218 = vmatpush.bf16.msra.mxu1 %v325_v5 }
  0x1b   :  { %139 = vmatpush.bf16.msra.mxu0 %v316_v6 }
  0x1c   :  { %219 = vmatpush.bf16.msra.mxu1 %v324_v7 }
  0x1f   :  { %140 = vmatpush.bf16.msra.mxu0 %v315_v8 }
  0x20   :  { %220 = vmatpush.bf16.msra.mxu1 %v323_v9 }
  0x23   :  { %141 = vmatpush.bf16.msra.mxu0 %v314_v10 }
  0x24   :  { %221 = vmatpush.bf16.msra.mxu1 %v322_v14 }
  0x27   :  { %142 = vmatpush.bf16.msra.mxu0 %v313_v11 }
  0x28   :  { %222 = vmatpush.bf16.msra.mxu1 %v321_v15 }
  0x2b   :  { %143 = vmatpush.bf16.msra.mxu0 %v312_v12 }
  0x2c   :  { %223 = vmatpush.bf16.msra.mxu1 %v320_v16 }
  0x2e   :  { %144 = vmatmul.bf16.vlgmr.msra.gmra.mxu0 %v67_v13 }
  0xab   :  { %v145_v18 = vpop.f32.mrf.mxu0 }
  0xac   :  { %v146_v19 = vadd.f32 %v334_v17, %v145_v18 }
  0xae   :  { %v149_v20 = vpack.c.bf16 %v146_v19, %v146_v19 }
  0xb0   :  { %150 = vst [vmem:[#allocation2] sm:$0xf] %v149_v20 }
  0xb3   :  { %v147_v21 = vpop.f32.mrf.mxu0 }
  0xb7   :  { %v151_v22 = vld [vmem:[#allocation2] sm:$0xf] }
  0xb8   :  { %224 = vmatmul.bf16.vlgmr.msra.gmra.mxu1 %v151_v22 }
 0x135   :  { %v225_v23 = vpop.f32.mrf.mxu1 }
 0x136   :  { %229 = vst [vmem:[#allocation9] sm:$0xff] %v225_v23 }
 0x137   :  { %240 = dma.vmem_to_hbm [thread:$0]  %s236_s6, 128, %s238_s9, [#allocation5]  }
 0x13d   :  { %v227_v24 = vpop.f32.mrf.mxu1 }
 0x13e   :  { %435 = dma.done.wait [#allocation5], 128  }
 0x13f   :  { %436 = vsyncadd [#allocation5], 4294967168 }
 0x140   :  { %245 = vsyncpa [#allocation4], 1 }
 0x141   :  { %246 = vsyncpa [#allocation7], 1 }
 0x142   :  { %247 = vsyncpa [#allocation5], 1 }

</bundles_post_ra>
